<compile_context>
chip_gen: v5e
topology: v5e:2x2
jax: 0.10.0
libtpu: 0.0.40
codegen_flags: <defaults>
</compile_context>

<pallas_src>
import functools

import jax
import jax.numpy as jnp
from jax.experimental import pallas as pl
from jax.experimental.pallas import tpu as pltpu


def _round_up(x: int, m: int) -> int:
    return ((x + m - 1) // m) * m


def make_actor_kernel(action_bound: float):
    def actor_kernel(s_ref, w1_ref, b1_ref, w2_ref, b2_ref, o_ref):
        # Hidden layer: x = relu(state @ W1 + b1); accumulate in f32.
        x = jnp.dot(s_ref[...], w1_ref[...], preferred_element_type=jnp.float32)
        x = jnp.maximum(x + b1_ref[...], 0.0)            # (TB, H) + (1, H), f32 VPU
        # Output layer: a = tanh(x @ W2 + b2) * action_bound
        a = jnp.dot(x.astype(w2_ref.dtype), w2_ref[...],
                    preferred_element_type=jnp.float32)
        a = a + b2_ref[...]                               # (TB, A) + (1, A), f32
        # tanh on EUP, scale is free VPU filler; store is lane-dense (A padded to 128).
        o_ref[...] = (jnp.tanh(a) * action_bound).astype(o_ref.dtype)

    return actor_kernel


@functools.partial(jax.jit, static_argnames=("action_bound", "matmul_dtype"))
def actor_forward(state, w1, b1, w2, b2, action_bound, matmul_dtype=jnp.float32):
    """Pallas TPU forward pass of the TD3 Actor MLP.

    state: (B, state_dim) f32
    w1:    (state_dim, hidden_dim) f32
    b1:    (1, hidden_dim) f32
    w2:    (hidden_dim, action_dim) f32
    b2:    (1, action_dim) f32
    returns: (B, action_dim) f32
    """
    B, S = state.shape
    H = w1.shape[1]
    A = w2.shape[1]

    # --- pad feature dims to 128 lanes (zero padding preserves the math) ---
    S_p = _round_up(S, 128)
    H_p = _round_up(H, 128)
    A_p = _round_up(A, 128)

    # --- pick batch tile (multiple of 8 sublanes, capped for v7x VMEM) ---
    TILE_B = 512 if B >= 512 else _round_up(B, 8)
    B_p = _round_up(B, TILE_B)

    f32 = jnp.float32
    state_p = jnp.zeros((B_p, S_p), f32).at[:B, :S].set(state.astype(f32))
    w1_p = jnp.zeros((S_p, H_p), f32).at[:S, :H].set(w1.astype(f32))
    b1_p = jnp.zeros((1, H_p), f32).at[:, :H].set(b1.astype(f32))
    w2_p = jnp.zeros((H_p, A_p), f32).at[:H, :A].set(w2.astype(f32))
    b2_p = jnp.zeros((1, A_p), f32).at[:, :A].set(b2.astype(f32))

    # bf16 matmul inputs (f32 accumulate) is the fast path on v6e/v7x MXUs.
    state_p = state_p.astype(matmul_dtype)
    w1_p = w1_p.astype(matmul_dtype)
    w2_p = w2_p.astype(matmul_dtype)

    grid = (B_p // TILE_B,)
    resident = lambda i: (0, 0)   # weights/biases stay VMEM-resident across tiles

    cost = pl.CostEstimate(
        flops=2 * B_p * (S_p * H_p + H_p * A_p),
        transcendentals=B_p * A_p,
        bytes_accessed=(state_p.size * state_p.dtype.itemsize
                        + w1_p.size * w1_p.dtype.itemsize
                        + w2_p.size * w2_p.dtype.itemsize
                        + b1_p.size * 4 + b2_p.size * 4
                        + B_p * A_p * 4),
    )

    out_p = pl.pallas_call(
        make_actor_kernel(float(action_bound)),
        out_shape=jax.ShapeDtypeStruct((B_p, A_p), jnp.float32),
        grid=grid,
        in_specs=[
            pl.BlockSpec((TILE_B, S_p), lambda i: (i, 0)),
            pl.BlockSpec((S_p, H_p), resident),
            pl.BlockSpec((1, H_p), resident),
            pl.BlockSpec((H_p, A_p), resident),
            pl.BlockSpec((1, A_p), resident),
        ],
        out_specs=pl.BlockSpec((TILE_B, A_p), lambda i: (i, 0)),
        compiler_params=pltpu.CompilerParams(
            dimension_semantics=("parallel",),
        ),
        cost_estimate=cost,
    )(state_p, w1_p, b1_p, w2_p, b2_p)

    # Slice away batch/feature padding.
    return out_p[:B, :A]


def actor_forward_ref(state, w1, b1, w2, b2, action_bound):
    """Pure-JAX reference for correctness check."""
    x = jax.nn.relu(state @ w1 + b1)
    return jnp.tanh(x @ w2 + b2) * action_bound


if __name__ == "__main__":
    # Small shapes consistent with the module's forward.
    batch, state_dim, hidden_dim, action_dim = 2, 8, 32, 4
    action_bound = 2.0

    key = jax.random.PRNGKey(0)
    k_s, k_w1, k_b1, k_w2, k_b2 = jax.random.split(key, 5)

    state = jax.random.normal(k_s, (batch, state_dim), dtype=jnp.float32)
    # Deterministic synthetic parameter init (roughly PyTorch Linear scale).
    w1 = jax.random.uniform(k_w1, (state_dim, hidden_dim), jnp.float32,
                            -1.0 / jnp.sqrt(state_dim), 1.0 / jnp.sqrt(state_dim))
    b1 = jax.random.uniform(k_b1, (1, hidden_dim), jnp.float32,
                            -1.0 / jnp.sqrt(state_dim), 1.0 / jnp.sqrt(state_dim))
    w2 = jax.random.uniform(k_w2, (hidden_dim, action_dim), jnp.float32,
                            -1.0 / jnp.sqrt(hidden_dim), 1.0 / jnp.sqrt(hidden_dim))
    b2 = jax.random.uniform(k_b2, (1, action_dim), jnp.float32,
                            -1.0 / jnp.sqrt(hidden_dim), 1.0 / jnp.sqrt(hidden_dim))

    out = actor_forward(state, w1, b1, w2, b2, action_bound)
    out = jax.block_until_ready(out)

    ref = actor_forward_ref(state, w1, b1, w2, b2, action_bound)
    assert out.shape == (batch, action_dim)
    assert jnp.allclose(out, ref, atol=1e-5, rtol=1e-5), "mismatch vs reference"
    print("KERNEL_OK")
</pallas_src>

<mosaic_0001>
module attributes {stable_mosaic.version = 11 : i64} {
  func.func @actor_kernel(%arg0: i32, %arg1: memref<8x128xf32, #tpu.memory_space<vmem>>, %arg2: memref<128x128xf32, #tpu.memory_space<vmem>>, %arg3: memref<1x128xf32, #tpu.memory_space<vmem>>, %arg4: memref<128x128xf32, #tpu.memory_space<vmem>>, %arg5: memref<1x128xf32, #tpu.memory_space<vmem>>, %arg6: memref<8x128xf32, #tpu.memory_space<vmem>>) attributes {dimension_semantics = [#tpu.dimension_semantics<parallel>], iteration_bounds = array<i64: 1>, scalar_prefetch = 0 : i64, scratch_operands = 0 : i64, tpu.core_type = #tpu.core_type<tc>, window_params = [{transform_indices = @transform_0, window_bounds = array<i64: 8, 128>}, {pipeline_mode = #tpu.pipeline_mode<synchronous>, transform_indices = @transform_1, window_bounds = array<i64: 128, 128>}, {pipeline_mode = #tpu.pipeline_mode<synchronous>, transform_indices = @transform_2, window_bounds = array<i64: 1, 128>}, {pipeline_mode = #tpu.pipeline_mode<synchronous>, transform_indices = @transform_3, window_bounds = array<i64: 128, 128>}, {pipeline_mode = #tpu.pipeline_mode<synchronous>, transform_indices = @transform_4, window_bounds = array<i64: 1, 128>}, {transform_indices = @transform_5, window_bounds = array<i64: 8, 128>}]} {
    %c0 = arith.constant 0 : index
    %c0_0 = arith.constant 0 : index
    %0 = vector.load %arg1[%c0, %c0_0] : memref<8x128xf32, #tpu.memory_space<vmem>>, vector<8x128xf32>
    %c0_1 = arith.constant 0 : index
    %c0_2 = arith.constant 0 : index
    %1 = vector.load %arg2[%c0_1, %c0_2] : memref<128x128xf32, #tpu.memory_space<vmem>>, vector<128x128xf32>
    %cst = arith.constant dense<0.000000e+00> : vector<8x128xf32>
    %2 = tpu.matmul %0, %1, %cst {dimension_numbers = #tpu.dot_dimension_numbers<[1], [0], [0], [1], [0, 0, 1, 1], [], []>} : vector<8x128xf32>, vector<128x128xf32>, vector<8x128xf32> -> vector<8x128xf32>
    %c0_3 = arith.constant 0 : index
    %c0_4 = arith.constant 0 : index
    %3 = vector.load %arg3[%c0_3, %c0_4] : memref<1x128xf32, #tpu.memory_space<vmem>>, vector<1x128xf32>
    %4 = vector.broadcast %3 : vector<1x128xf32> to vector<8x128xf32>
    %5 = arith.addf %2, %4 : vector<8x128xf32>
    %cst_5 = arith.constant 0.000000e+00 : f32
    %6 = vector.broadcast %cst_5 : f32 to vector<8x128xf32>
    %7 = arith.maximumf %5, %6 : vector<8x128xf32>
    %c0_6 = arith.constant 0 : index
    %c0_7 = arith.constant 0 : index
    %8 = vector.load %arg4[%c0_6, %c0_7] : memref<128x128xf32, #tpu.memory_space<vmem>>, vector<128x128xf32>
    %cst_8 = arith.constant dense<0.000000e+00> : vector<8x128xf32>
    %9 = tpu.matmul %7, %8, %cst_8 {dimension_numbers = #tpu.dot_dimension_numbers<[1], [0], [0], [1], [0, 0, 1, 1], [], []>} : vector<8x128xf32>, vector<128x128xf32>, vector<8x128xf32> -> vector<8x128xf32>
    %c0_9 = arith.constant 0 : index
    %c0_10 = arith.constant 0 : index
    %10 = vector.load %arg5[%c0_9, %c0_10] : memref<1x128xf32, #tpu.memory_space<vmem>>, vector<1x128xf32>
    %11 = vector.broadcast %10 : vector<1x128xf32> to vector<8x128xf32>
    %12 = arith.addf %9, %11 : vector<8x128xf32>
    %13 = math.tanh %12 : vector<8x128xf32>
    %cst_11 = arith.constant 2.000000e+00 : f32
    %14 = vector.broadcast %cst_11 : f32 to vector<8x128xf32>
    %15 = arith.mulf %13, %14 : vector<8x128xf32>
    %c0_12 = arith.constant 0 : index
    %c0_13 = arith.constant 0 : index
    %16 = vector.load %arg6[%c0_12, %c0_13] : memref<8x128xf32, #tpu.memory_space<vmem>>, vector<8x128xf32>
    tpu.vector_store %arg6[%c0_12, %c0_13], %15 {strides = array<i32>} : memref<8x128xf32, #tpu.memory_space<vmem>>, vector<8x128xf32>,
    return
  }
  func.func @transform_0(%arg0: i32) -> (i32, i32) {
    %c0_i32 = arith.constant 0 : i32
    %c0_i32_0 = arith.constant 0 : i32
    return %arg0, %c0_i32 : i32, i32
  }
  func.func @transform_1(%arg0: i32) -> (i32, i32) {
    %c0_i32 = arith.constant 0 : i32
    %c0_i32_0 = arith.constant 0 : i32
    %c0_i32_1 = arith.constant 0 : i32
    return %c0_i32, %c0_i32_0 : i32, i32
  }
  func.func @transform_2(%arg0: i32) -> (i32, i32) {
    %c0_i32 = arith.constant 0 : i32
    %c0_i32_0 = arith.constant 0 : i32
    %c0_i32_1 = arith.constant 0 : i32
    return %c0_i32, %c0_i32_0 : i32, i32
  }
  func.func @transform_3(%arg0: i32) -> (i32, i32) {
    %c0_i32 = arith.constant 0 : i32
    %c0_i32_0 = arith.constant 0 : i32
    %c0_i32_1 = arith.constant 0 : i32
    return %c0_i32, %c0_i32_0 : i32, i32
  }
  func.func @transform_4(%arg0: i32) -> (i32, i32) {
    %c0_i32 = arith.constant 0 : i32
    %c0_i32_0 = arith.constant 0 : i32
    %c0_i32_1 = arith.constant 0 : i32
    return %c0_i32, %c0_i32_0 : i32, i32
  }
  func.func @transform_5(%arg0: i32) -> (i32, i32) {
    %c0_i32 = arith.constant 0 : i32
    %c0_i32_0 = arith.constant 0 : i32
    return %arg0, %c0_i32 : i32, i32
  }
}

</mosaic_0001>

<bundles_post_ra>
// kernel: actor_forward.1
= control target key start
LH: loop header
LB: loop body
LE: loop exit
PB: predicated region body
PF: predicated region fallthrough
CT: control target
= control target key end

     0   :  { %s251_s1 = inlined_call_operand.vmem [shape: f32[128,128], index: 1, kind: input, shape index: {}]   ;;  %s252_s3 = inlined_call_operand.vmem [shape: f32[128,128], index: 3, kind: input, shape index: {}]   ;;  %s253_s2 = inlined_call_operand.vmem [shape: f32[1,128], index: 2, kind: input, shape index: {}]   ;;  %s254_s0 = inlined_call_operand.vmem [shape: f32[8,128], index: 0, kind: input, shape index: {}]   ;;  %s255_s4 = inlined_call_operand.vmem [shape: f32[1,128], index: 4, kind: input, shape index: {}]   ;;  %s256_s5 = inlined_call_operand.vmem [shape: f32[8,128], index: 5, kind: output, shape index: {}]  }
   0x1   :  { %v36_v0 = vld [vmem:[%s251_s1 + $0x78] sm:$0xff]  ;;  %v35_v1 = vld [vmem:[%s251_s1 + $0x70] sm:$0xff]  ;;  %v34_v2 = vld [vmem:[%s251_s1 + $0x68] sm:$0xff] }
   0x2   :  { %41 = vmatpush.msra.mxu0 %v36_v0  ;;  %v33_v3 = vld [vmem:[%s251_s1 + $0x60] sm:$0xff]  ;;  %v77_v4 = vld [vmem:[%s252_s3 + $0x78] sm:$0xff]  ;;  %v76_v6 = vld [vmem:[%s252_s3 + $0x70] sm:$0xff] }
   0x3   :  { %v32_v5 = vld [vmem:[%s251_s1 + $0x58] sm:$0xff]  ;;  %82 = vmatpush.msra.mxu1 %v77_v4  ;;  %v75_v7 = vld [vmem:[%s252_s3 + $0x68] sm:$0xff]  ;;  %v31_v8 = vld [vmem:[%s251_s1 + $0x50] sm:$0xff] }
   0x4   :  { %42 = vmatpush.msra.mxu0 %v35_v1  ;;  %v74_v9 = vld [vmem:[%s252_s3 + $0x60] sm:$0xff]  ;;  %v30_v10 = vld [vmem:[%s251_s1 + $0x48] sm:$0xff]  ;;  %v73_v11 = vld [vmem:[%s252_s3 + $0x58] sm:$0xff] }
   0x5   :  { %83 = vmatpush.msra.mxu1 %v76_v6  ;;  %v29_v12 = vld [vmem:[%s251_s1 + $0x40] sm:$0xff]  ;;  %v72_v13 = vld [vmem:[%s252_s3 + $0x50] sm:$0xff]  ;;  %v28_v14 = vld [vmem:[%s251_s1 + $0x38] sm:$0xff] }
   0x6   :  { %43 = vmatpush.msra.mxu0 %v34_v2  ;;  %v71_v15 = vld [vmem:[%s252_s3 + $0x48] sm:$0xff]  ;;  %v27_v16 = vld [vmem:[%s251_s1 + $0x30] sm:$0xff]  ;;  %v70_v17 = vld [vmem:[%s252_s3 + $0x40] sm:$0xff] }
   0x7   :  { %84 = vmatpush.msra.mxu1 %v75_v7  ;;  %v26_v18 = vld [vmem:[%s251_s1 + $0x28] sm:$0xff]  ;;  %v69_v19 = vld [vmem:[%s252_s3 + $0x38] sm:$0xff]  ;;  %v25_v20 = vld [vmem:[%s251_s1 + $0x20] sm:$0xff] }
   0x8   :  { %44 = vmatpush.msra.mxu0 %v33_v3  ;;  %v68_v21 = vld [vmem:[%s252_s3 + $0x30] sm:$0xff]  ;;  %v24_v22 = vld [vmem:[%s251_s1 + $0x18] sm:$0xff]  ;;  %v67_v23 = vld [vmem:[%s252_s3 + $0x28] sm:$0xff] }
   0x9   :  { %85 = vmatpush.msra.mxu1 %v74_v9  ;;  %v23_v24 = vld [vmem:[%s251_s1 + $0x10] sm:$0xff]  ;;  %v66_v25 = vld [vmem:[%s252_s3 + $0x20] sm:$0xff]  ;;  %v22_v26 = vld [vmem:[%s251_s1 + $0x8] sm:$0xff] }
   0xa   :  { %45 = vmatpush.msra.mxu0 %v32_v5  ;;  %v65_v27 = vld [vmem:[%s252_s3 + $0x18] sm:$0xff]  ;;  %v21_v28 = vld [vmem:[%s251_s1] sm:$0xff]  ;;  %v64_v30 = vld [vmem:[%s252_s3 + $0x10] sm:$0xff] }
   0xb   :  { %86 = vmatpush.msra.mxu1 %v73_v11  ;;  %v20_v29 = vld [vmem:[%s254_s0] sm:$0xff]  ;;  %v63_v31 = vld [vmem:[%s252_s3 + $0x8] sm:$0xff] }
   0xc   :  { %46 = vmatpush.msra.mxu0 %v31_v8  ;;  %v62_v32 = vld [vmem:[%s252_s3] sm:$0xff] }
   0xd   :  { %87 = vmatpush.msra.mxu1 %v72_v13  ;;  %v109_v33 = vld [vmem:[%s253_s2] ss:$0 sm:$0xff] }
   0xe   :  { %47 = vmatpush.msra.mxu0 %v30_v10  ;;  %v110_v37 = vld [vmem:[%s255_s4] ss:$0 sm:$0xff] }
   0xf   :  { %88 = vmatpush.msra.mxu1 %v71_v15 }
  0x10   :  { %48 = vmatpush.msra.mxu0 %v29_v12 }
  0x11   :  { %89 = vmatpush.msra.mxu1 %v70_v17 }
  0x12   :  { %49 = vmatpush.msra.mxu0 %v28_v14 }
  0x13   :  { %90 = vmatpush.msra.mxu1 %v69_v19 }
  0x14   :  { %50 = vmatpush.msra.mxu0 %v27_v16 }
  0x15   :  { %91 = vmatpush.msra.mxu1 %v68_v21 }
  0x16   :  { %51 = vmatpush.msra.mxu0 %v26_v18 }
  0x17   :  { %92 = vmatpush.msra.mxu1 %v67_v23 }
  0x18   :  { %52 = vmatpush.msra.mxu0 %v25_v20 }
  0x19   :  { %93 = vmatpush.msra.mxu1 %v66_v25 }
  0x1a   :  { %53 = vmatpush.msra.mxu0 %v24_v22 }
  0x1b   :  { %94 = vmatpush.msra.mxu1 %v65_v27 }
  0x1c   :  { %54 = vmatpush.msra.mxu0 %v23_v24 }
  0x1d   :  { %95 = vmatpush.msra.mxu1 %v64_v30 }
  0x1e   :  { %55 = vmatpush.msra.mxu0 %v22_v26 }
  0x1f   :  { %96 = vmatpush.msra.mxu1 %v63_v31 }
  0x20   :  { %56 = vmatpush.msra.mxu0 %v21_v28 }
  0x21   :  { %57 = vmatmul.f32.vlgmr.msra.gmra.mxu0 %v20_v29  ;;  %97 = vmatpush.msra.mxu1 %v62_v32 }
  0x9e   :  { %v58_v34 = vpop.f32.mrf.mxu0 }
  0x9f   :  { %v59_v35 = vadd.f32 %v109_v33, %v58_v34 }
  0xa1   :  { %v61_v36 = vmax.f32 %v59_v35, 0.0 }
  0xa3   :  { %98 = vmatmul.f32.vlgmr.msra.gmra.mxu1 %v61_v36 }
 0x120   :  { %v99_v38 = vpop.f32.mrf.mxu1 }
 0x121   :  { %v100_v39 = vadd.f32 %v110_v37, %v99_v38 }
 0x123   :  { %111 = vtanh.f32 %v100_v39 }
 0x129   :  { %v112_v40 = vpop.eup %111 }
 0x12a   :  { %v103_v41 = vmul.f32 2.0, %v112_v40 }
 0x12c   :  { %104 = vst [vmem:[%s256_s5] sm:$0xff] %v103_v41 }

</bundles_post_ra>
